<compile_context>
chip_gen: v7x
topology: tpu7x:2x2x1
jax: 0.10.0
libtpu: 0.0.40
codegen_flags: <defaults>
</compile_context>

<pallas_src>
import functools

import jax
import jax.numpy as jnp
from jax.experimental import pallas as pl
from jax.experimental.pallas import tpu as pltpu


def _ceil_to(v, m):
    return ((v + m - 1) // m) * m


def _pad_to(a, shape):
    pads = [(0, t - s) for s, t in zip(a.shape, shape)]
    return jnp.pad(a, pads)


def mlp_kernel(n_hidden, x_ref, w0_ref, b0_ref, vh_ref, sh_ref, bh_ref,
               wf_ref, bf_ref, o_ref):
    """One batch tile through the whole MLP. Matmuls hit the MXU in bf16 with
    f32 accumulation; bias / weight-norm scale / ReLU stay in f32."""
    # First linear + ReLU.
    h = jnp.dot(x_ref[...], w0_ref[...], preferred_element_type=jnp.float32)
    h = jnp.maximum(h + b0_ref[...], 0.0)

    # (depth - 1) weight-normalized layers.  weight_norm fold:
    #   h @ (v_t * s) == (h @ v_t) * s,   s = g / ||v_col||  (precomputed).
    for i in range(n_hidden):
        hv = jnp.dot(h.astype(jnp.bfloat16), vh_ref[i],
                     preferred_element_type=jnp.float32)
        h = jnp.maximum(hv * sh_ref[i] + bh_ref[i], 0.0)

    # Final linear (no activation); lane-dense (128-padded) store.
    out = jnp.dot(h.astype(jnp.bfloat16), wf_ref[...],
                  preferred_element_type=jnp.float32)
    o_ref[...] = out + bf_ref[...]


def mlp_forward(x, params, depth, *, block_batch=256, lane=128):
    (w0_t, b0, vh_t, gh, bh, wf_t, bf) = params
    batch, in_dim = x.shape
    width = w0_t.shape[1]
    out_dim = wf_t.shape[1]
    n_hidden = depth - 1

    # --- weight-norm per-column scale (once per forward, batch independent) --
    if n_hidden > 0:
        v32 = vh_t.astype(jnp.float32)
        col_sq = jnp.sum(v32 * v32, axis=1, keepdims=True)       # (n_h, 1, width)
        sh = gh.astype(jnp.float32) * jax.lax.rsqrt(col_sq)      # g / ||v_col||
    else:
        sh = jnp.zeros((0, 1, width), jnp.float32)

    # --- pad to MXU/lane-friendly shapes --------------------------------------
    # TODO(synk): for production widths on v6e/v7x pad to multiples of 256 and
    # block the hidden layers over layer/K if resident weights exceed v7x's
    # 64 MiB VMEM.
    in_p = _ceil_to(in_dim, lane)
    w_p = _ceil_to(width, lane)
    out_p = _ceil_to(out_dim, lane)
    bb = min(block_batch, _ceil_to(batch, 8))
    b_p = _ceil_to(batch, bb)
    n_h_eff = max(n_hidden, 1)

    x_p = _pad_to(x, (b_p, in_p)).astype(jnp.bfloat16)
    w0_p = _pad_to(w0_t, (in_p, w_p)).astype(jnp.bfloat16)
    b0_p = _pad_to(b0, (1, w_p)).astype(jnp.float32)
    if n_hidden > 0:
        vh_p = _pad_to(vh_t, (n_hidden, w_p, w_p)).astype(jnp.bfloat16)
        sh_p = _pad_to(sh, (n_hidden, 1, w_p)).astype(jnp.float32)
        bh_p = _pad_to(bh, (n_hidden, 1, w_p)).astype(jnp.float32)
    else:  # dummy placeholders, never read (kernel loop has zero iterations)
        vh_p = jnp.zeros((1, w_p, w_p), jnp.bfloat16)
        sh_p = jnp.zeros((1, 1, w_p), jnp.float32)
        bh_p = jnp.zeros((1, 1, w_p), jnp.float32)
    wf_p = _pad_to(wf_t, (w_p, out_p)).astype(jnp.bfloat16)
    bf_p = _pad_to(bf, (1, out_p)).astype(jnp.float32)

    # --- VMEM budget: resident weights + double-buffered activation tiles ----
    def _nbytes(a):
        return a.size * a.dtype.itemsize

    resident = sum(_nbytes(a) for a in (w0_p, b0_p, vh_p, sh_p, bh_p, wf_p, bf_p))
    io_tiles = 2 * bb * in_p * 2 + 2 * bb * out_p * 4    # 2x-buffered in/out tiles
    live_act = 2 * bb * w_p * 4                          # f32 hidden activations
    vmem_limit = 2 * resident + io_tiles + live_act + (8 << 20)
    vmem_limit = max(32 << 20, min(int(vmem_limit), 64 << 20))

    grid = (b_p // bb,)
    kernel = functools.partial(mlp_kernel, n_hidden)

    out_full = pl.pallas_call(
        kernel,
        out_shape=jax.ShapeDtypeStruct((b_p, out_p), jnp.float32),
        grid=grid,
        in_specs=[
            pl.BlockSpec((bb, in_p), lambda i: (i, 0)),              # x (streamed)
            pl.BlockSpec((in_p, w_p), lambda i: (0, 0)),             # w0 (resident)
            pl.BlockSpec((1, w_p), lambda i: (0, 0)),                # b0
            pl.BlockSpec((n_h_eff, w_p, w_p), lambda i: (0, 0, 0)),  # v_t stack
            pl.BlockSpec((n_h_eff, 1, w_p), lambda i: (0, 0, 0)),    # wn scales
            pl.BlockSpec((n_h_eff, 1, w_p), lambda i: (0, 0, 0)),    # hidden biases
            pl.BlockSpec((w_p, out_p), lambda i: (0, 0)),            # w_final
            pl.BlockSpec((1, out_p), lambda i: (0, 0)),              # b_final
        ],
        out_specs=pl.BlockSpec((bb, out_p), lambda i: (i, 0)),
        compiler_params=pltpu.CompilerParams(
            dimension_semantics=("parallel",),
            vmem_limit_bytes=vmem_limit,
        ),
    )(x_p, w0_p, b0_p, vh_p, sh_p, bh_p, wf_p, bf_p)

    return out_full[:batch, :out_dim]


def init_params(key, input_dim, output_dim, depth, width):
    """Deterministic synthetic parameters matching the torch module's shapes."""
    keys = jax.random.split(key, 8)
    # Linear(input_dim -> width): torch weight is (width, input_dim); store transposed.
    w0_t = jax.random.normal(keys[0], (input_dim, width), jnp.float32) * 0.1
    b0 = jax.random.normal(keys[1], (1, width), jnp.float32) * 0.01
    # (depth - 1) weight-normalized Linear(width -> width):
    #   v stored transposed (in, out); g -> (1, width) per layer.
    n_hidden = max(depth - 1, 0)
    vh_t = jax.random.normal(keys[2], (n_hidden, width, width), jnp.float32) * 0.1
    gh = jax.random.normal(keys[3], (n_hidden, 1, width), jnp.float32) * 0.1 + 1.0
    bh = jax.random.normal(keys[4], (n_hidden, 1, width), jnp.float32) * 0.01
    # Linear(width -> output_dim): torch weight is (output_dim, width); store transposed.
    wf_t = jax.random.normal(keys[5], (width, output_dim), jnp.float32) * 0.1
    bf = jax.random.normal(keys[6], (1, output_dim), jnp.float32) * 0.01
    return (w0_t, b0, vh_t, gh, bh, wf_t, bf)


def mlp_reference(x, params, depth):
    """Pure-JAX reference with the same bf16-matmul / f32-accumulate numerics
    and torch-equivalent weight_norm semantics (norm over each neuron's inputs)."""
    (w0_t, b0, vh_t, gh, bh, wf_t, bf) = params
    h = jnp.dot(x.astype(jnp.bfloat16), w0_t.astype(jnp.bfloat16),
                preferred_element_type=jnp.float32)
    h = jnp.maximum(h + b0, 0.0)
    for i in range(depth - 1):
        v32 = vh_t[i].astype(jnp.float32)
        s = gh[i] * jax.lax.rsqrt(jnp.sum(v32 * v32, axis=0, keepdims=True))
        hv = jnp.dot(h.astype(jnp.bfloat16), vh_t[i].astype(jnp.bfloat16),
                     preferred_element_type=jnp.float32)
        h = jnp.maximum(hv * s + bh[i], 0.0)
    out = jnp.dot(h.astype(jnp.bfloat16), wf_t.astype(jnp.bfloat16),
                  preferred_element_type=jnp.float32)
    return out + bf


if __name__ == "__main__":
    # Small shapes consistent with the module: Network(16, 4, depth=3, width=32)
    batch = 8
    input_dim = 16
    output_dim = 4
    depth = 3
    width = 32

    key = jax.random.PRNGKey(0)
    kx, kp = jax.random.split(key)
    x = jax.random.normal(kx, (batch, input_dim), jnp.float32)

    # depth = 3 (two weight-normalized hidden layers)
    params = init_params(kp, input_dim, output_dim, depth, width)
    out = jax.block_until_ready(mlp_forward(x, params, depth))
    ref = mlp_reference(x, params, depth)
    assert out.shape == (batch, output_dim)
    assert jnp.allclose(out, ref, atol=1e-3, rtol=1e-3), "mismatch vs reference"

    # depth = 1 edge case (no weight-normalized layers)
    params1 = init_params(kp, input_dim, output_dim, 1, width)
    out1 = jax.block_until_ready(mlp_forward(x, params1, 1))
    ref1 = mlp_reference(x, params1, 1)
    assert out1.shape == (batch, output_dim)
    assert jnp.allclose(out1, ref1, atol=1e-3, rtol=1e-3), "mismatch (depth=1)"

    print("KERNEL_OK")
</pallas_src>

<mosaic_0001>
module attributes {stable_mosaic.version = 11 : i64} {
  func.func @mlp_kernel(%arg0: i32, %arg1: memref<8x128xbf16, #tpu.memory_space<vmem>>, %arg2: memref<128x128xbf16, #tpu.memory_space<vmem>>, %arg3: memref<1x128xf32, #tpu.memory_space<vmem>>, %arg4: memref<2x128x128xbf16, #tpu.memory_space<vmem>>, %arg5: memref<2x1x128xf32, #tpu.memory_space<vmem>>, %arg6: memref<2x1x128xf32, #tpu.memory_space<vmem>>, %arg7: memref<128x128xbf16, #tpu.memory_space<vmem>>, %arg8: memref<1x128xf32, #tpu.memory_space<vmem>>, %arg9: memref<8x128xf32, #tpu.memory_space<vmem>>) attributes {dimension_semantics = [#tpu.dimension_semantics<parallel>], iteration_bounds = array<i64: 1>, scalar_prefetch = 0 : i64, scratch_operands = 0 : i64, tpu.core_type = #tpu.core_type<tc>, window_params = [{transform_indices = @transform_0, window_bounds = array<i64: 8, 128>}, {pipeline_mode = #tpu.pipeline_mode<synchronous>, transform_indices = @transform_1, window_bounds = array<i64: 128, 128>}, {pipeline_mode = #tpu.pipeline_mode<synchronous>, transform_indices = @transform_2, window_bounds = array<i64: 1, 128>}, {pipeline_mode = #tpu.pipeline_mode<synchronous>, transform_indices = @transform_3, window_bounds = array<i64: 2, 128, 128>}, {pipeline_mode = #tpu.pipeline_mode<synchronous>, transform_indices = @transform_4, window_bounds = array<i64: 2, 1, 128>}, {pipeline_mode = #tpu.pipeline_mode<synchronous>, transform_indices = @transform_5, window_bounds = array<i64: 2, 1, 128>}, {pipeline_mode = #tpu.pipeline_mode<synchronous>, transform_indices = @transform_6, window_bounds = array<i64: 128, 128>}, {pipeline_mode = #tpu.pipeline_mode<synchronous>, transform_indices = @transform_7, window_bounds = array<i64: 1, 128>}, {transform_indices = @transform_8, window_bounds = array<i64: 8, 128>}]} {
    %c0 = arith.constant 0 : index
    %c0_0 = arith.constant 0 : index
    %0 = vector.load %arg1[%c0, %c0_0] : memref<8x128xbf16, #tpu.memory_space<vmem>>, vector<8x128xbf16>
    %c0_1 = arith.constant 0 : index
    %c0_2 = arith.constant 0 : index
    %1 = vector.load %arg2[%c0_1, %c0_2] : memref<128x128xbf16, #tpu.memory_space<vmem>>, vector<128x128xbf16>
    %cst = arith.constant dense<0.000000e+00> : vector<8x128xf32>
    %2 = tpu.matmul %0, %1, %cst {dimension_numbers = #tpu.dot_dimension_numbers<[1], [0], [0], [1], [0, 0, 1, 1], [], []>} : vector<8x128xbf16>, vector<128x128xbf16>, vector<8x128xf32> -> vector<8x128xf32>
    %c0_3 = arith.constant 0 : index
    %c0_4 = arith.constant 0 : index
    %3 = vector.load %arg3[%c0_3, %c0_4] : memref<1x128xf32, #tpu.memory_space<vmem>>, vector<1x128xf32>
    %4 = vector.broadcast %3 : vector<1x128xf32> to vector<8x128xf32>
    %5 = arith.addf %2, %4 : vector<8x128xf32>
    %cst_5 = arith.constant 0.000000e+00 : f32
    %6 = vector.broadcast %cst_5 : f32 to vector<8x128xf32>
    %7 = arith.maximumf %5, %6 : vector<8x128xf32>
    %8 = arith.truncf %7 : vector<8x128xf32> to vector<8x128xbf16>
    %c0_6 = arith.constant 0 : index
    %c0_7 = arith.constant 0 : index
    %c0_8 = arith.constant 0 : index
    %9 = vector.load %arg4[%c0_6, %c0_7, %c0_8] : memref<2x128x128xbf16, #tpu.memory_space<vmem>>, vector<1x128x128xbf16>
    %10 = vector.shape_cast %9 : vector<1x128x128xbf16> to vector<128x128xbf16>
    %cst_9 = arith.constant dense<0.000000e+00> : vector<8x128xf32>
    %11 = tpu.matmul %8, %10, %cst_9 {dimension_numbers = #tpu.dot_dimension_numbers<[1], [0], [0], [1], [0, 0, 1, 1], [], []>} : vector<8x128xbf16>, vector<128x128xbf16>, vector<8x128xf32> -> vector<8x128xf32>
    %c0_10 = arith.constant 0 : index
    %c0_11 = arith.constant 0 : index
    %c0_12 = arith.constant 0 : index
    %12 = vector.load %arg5[%c0_10, %c0_11, %c0_12] : memref<2x1x128xf32, #tpu.memory_space<vmem>>, vector<1x1x128xf32>
    %13 = vector.shape_cast %12 : vector<1x1x128xf32> to vector<1x128xf32>
    %14 = vector.broadcast %13 : vector<1x128xf32> to vector<8x128xf32>
    %15 = arith.mulf %11, %14 : vector<8x128xf32>
    %c0_13 = arith.constant 0 : index
    %c0_14 = arith.constant 0 : index
    %c0_15 = arith.constant 0 : index
    %16 = vector.load %arg6[%c0_13, %c0_14, %c0_15] : memref<2x1x128xf32, #tpu.memory_space<vmem>>, vector<1x1x128xf32>
    %17 = vector.shape_cast %16 : vector<1x1x128xf32> to vector<1x128xf32>
    %18 = vector.broadcast %17 : vector<1x128xf32> to vector<8x128xf32>
    %19 = arith.addf %15, %18 : vector<8x128xf32>
    %cst_16 = arith.constant 0.000000e+00 : f32
    %20 = vector.broadcast %cst_16 : f32 to vector<8x128xf32>
    %21 = arith.maximumf %19, %20 : vector<8x128xf32>
    %22 = arith.truncf %21 : vector<8x128xf32> to vector<8x128xbf16>
    %c1 = arith.constant 1 : index
    %c0_17 = arith.constant 0 : index
    %c0_18 = arith.constant 0 : index
    %23 = vector.load %arg4[%c1, %c0_17, %c0_18] : memref<2x128x128xbf16, #tpu.memory_space<vmem>>, vector<1x128x128xbf16>
    %24 = vector.shape_cast %23 : vector<1x128x128xbf16> to vector<128x128xbf16>
    %cst_19 = arith.constant dense<0.000000e+00> : vector<8x128xf32>
    %25 = tpu.matmul %22, %24, %cst_19 {dimension_numbers = #tpu.dot_dimension_numbers<[1], [0], [0], [1], [0, 0, 1, 1], [], []>} : vector<8x128xbf16>, vector<128x128xbf16>, vector<8x128xf32> -> vector<8x128xf32>
    %c1_20 = arith.constant 1 : index
    %c0_21 = arith.constant 0 : index
    %c0_22 = arith.constant 0 : index
    %26 = vector.load %arg5[%c1_20, %c0_21, %c0_22] : memref<2x1x128xf32, #tpu.memory_space<vmem>>, vector<1x1x128xf32>
    %27 = vector.shape_cast %26 : vector<1x1x128xf32> to vector<1x128xf32>
    %28 = vector.broadcast %27 : vector<1x128xf32> to vector<8x128xf32>
    %29 = arith.mulf %25, %28 : vector<8x128xf32>
    %c1_23 = arith.constant 1 : index
    %c0_24 = arith.constant 0 : index
    %c0_25 = arith.constant 0 : index
    %30 = vector.load %arg6[%c1_23, %c0_24, %c0_25] : memref<2x1x128xf32, #tpu.memory_space<vmem>>, vector<1x1x128xf32>
    %31 = vector.shape_cast %30 : vector<1x1x128xf32> to vector<1x128xf32>
    %32 = vector.broadcast %31 : vector<1x128xf32> to vector<8x128xf32>
    %33 = arith.addf %29, %32 : vector<8x128xf32>
    %cst_26 = arith.constant 0.000000e+00 : f32
    %34 = vector.broadcast %cst_26 : f32 to vector<8x128xf32>
    %35 = arith.maximumf %33, %34 : vector<8x128xf32>
    %36 = arith.truncf %35 : vector<8x128xf32> to vector<8x128xbf16>
    %c0_27 = arith.constant 0 : index
    %c0_28 = arith.constant 0 : index
    %37 = vector.load %arg7[%c0_27, %c0_28] : memref<128x128xbf16, #tpu.memory_space<vmem>>, vector<128x128xbf16>
    %cst_29 = arith.constant dense<0.000000e+00> : vector<8x128xf32>
    %38 = tpu.matmul %36, %37, %cst_29 {dimension_numbers = #tpu.dot_dimension_numbers<[1], [0], [0], [1], [0, 0, 1, 1], [], []>} : vector<8x128xbf16>, vector<128x128xbf16>, vector<8x128xf32> -> vector<8x128xf32>
    %c0_30 = arith.constant 0 : index
    %c0_31 = arith.constant 0 : index
    %39 = vector.load %arg8[%c0_30, %c0_31] : memref<1x128xf32, #tpu.memory_space<vmem>>, vector<1x128xf32>
    %40 = vector.broadcast %39 : vector<1x128xf32> to vector<8x128xf32>
    %41 = arith.addf %38, %40 : vector<8x128xf32>
    %c0_32 = arith.constant 0 : index
    %c0_33 = arith.constant 0 : index
    %42 = vector.load %arg9[%c0_32, %c0_33] : memref<8x128xf32, #tpu.memory_space<vmem>>, vector<8x128xf32>
    tpu.vector_store %arg9[%c0_32, %c0_33], %41 {strides = array<i32>} : memref<8x128xf32, #tpu.memory_space<vmem>>, vector<8x128xf32>,
    return
  }
  func.func @transform_0(%arg0: i32) -> (i32, i32) {
    %c0_i32 = arith.constant 0 : i32
    %c0_i32_0 = arith.constant 0 : i32
    return %arg0, %c0_i32 : i32, i32
  }
  func.func @transform_1(%arg0: i32) -> (i32, i32) {
    %c0_i32 = arith.constant 0 : i32
    %c0_i32_0 = arith.constant 0 : i32
    %c0_i32_1 = arith.constant 0 : i32
    return %c0_i32, %c0_i32_0 : i32, i32
  }
  func.func @transform_2(%arg0: i32) -> (i32, i32) {
    %c0_i32 = arith.constant 0 : i32
    %c0_i32_0 = arith.constant 0 : i32
    %c0_i32_1 = arith.constant 0 : i32
    return %c0_i32, %c0_i32_0 : i32, i32
  }
  func.func @transform_3(%arg0: i32) -> (i32, i32, i32) {
    %c0_i32 = arith.constant 0 : i32
    %c0_i32_0 = arith.constant 0 : i32
    %c0_i32_1 = arith.constant 0 : i32
    %c0_i32_2 = arith.constant 0 : i32
    return %c0_i32, %c0_i32_0, %c0_i32_1 : i32, i32, i32
  }
  func.func @transform_4(%arg0: i32) -> (i32, i32, i32) {
    %c0_i32 = arith.constant 0 : i32
    %c0_i32_0 = arith.constant 0 : i32
    %c0_i32_1 = arith.constant 0 : i32
    %c0_i32_2 = arith.constant 0 : i32
    return %c0_i32, %c0_i32_0, %c0_i32_1 : i32, i32, i32
  }
  func.func @transform_5(%arg0: i32) -> (i32, i32, i32) {
    %c0_i32 = arith.constant 0 : i32
    %c0_i32_0 = arith.constant 0 : i32
    %c0_i32_1 = arith.constant 0 : i32
    %c0_i32_2 = arith.constant 0 : i32
    return %c0_i32, %c0_i32_0, %c0_i32_1 : i32, i32, i32
  }
  func.func @transform_6(%arg0: i32) -> (i32, i32) {
    %c0_i32 = arith.constant 0 : i32
    %c0_i32_0 = arith.constant 0 : i32
    %c0_i32_1 = arith.constant 0 : i32
    return %c0_i32, %c0_i32_0 : i32, i32
  }
  func.func @transform_7(%arg0: i32) -> (i32, i32) {
    %c0_i32 = arith.constant 0 : i32
    %c0_i32_0 = arith.constant 0 : i32
    %c0_i32_1 = arith.constant 0 : i32
    return %c0_i32, %c0_i32_0 : i32, i32
  }
  func.func @transform_8(%arg0: i32) -> (i32, i32) {
    %c0_i32 = arith.constant 0 : i32
    %c0_i32_0 = arith.constant 0 : i32
    return %arg0, %c0_i32 : i32, i32
  }
}

</mosaic_0001>

<bundles_post_ra>
// kernel: tpu_custom_call.1
= control target key start
LH: loop header
LB: loop body
LE: loop exit
PB: predicated region body
PF: predicated region fallthrough
CT: control target
= control target key end

     0   :  { %13 = vsyncpa [#allocation3], 0  ;;  %s1070_s0 = inlined_call_operand.hbm [shape: bf16[8,128], index: 0, kind: input, shape index: {}]   ;;  %s1071_s1 = inlined_call_operand.hbm [shape: bf16[128,128], index: 1, kind: input, shape index: {}]   ;;  %s1072_s2 = inlined_call_operand.vmem [shape: f32[1,128], index: 2, kind: input, shape index: {}]   ;;  %s1073_s3 = inlined_call_operand.hbm [shape: bf16[2,128,128], index: 3, kind: input, shape index: {}]   ;;  %s1074_s4 = inlined_call_operand.vmem [shape: f32[2,1,128], index: 4, kind: input, shape index: {}]   ;;  %s1075_s5 = inlined_call_operand.vmem [shape: f32[2,1,128], index: 5, kind: input, shape index: {}]   ;;  %s1076_s6 = inlined_call_operand.hbm [shape: bf16[128,128], index: 6, kind: input, shape index: {}]   ;;  %s1077_s7 = inlined_call_operand.vmem [shape: f32[1,128], index: 7, kind: input, shape index: {}]   ;;  %s1078_s8 = inlined_call_operand.hbm [shape: f32[8,128], index: 8, kind: output, shape index: {}]  }
   0x1   :  { %14 = vsyncpa [#allocation6], 0 }
   0x2   :  { %15 = vsyncpa [#allocation9], 0 }
   0x3   :  { %16 = vsyncpa [#allocation4], 0  ;;  %s889_s27 = smov [#allocation5]   ;;  %s771_s9 = scalar_lea.hbm %s1071_s1, 1024 }
   0x4   :  { %s32_s28 = sshll.u32 %s889_s27, 4  ;;  %p772_p0 = scmp.ne.s32.totalorder %s1071_s1, %s771_s9  ;;  %s33_s28 = int_to_ptr.vmem [resolvable:$true] %s32_s28 }
   0x5   :  { %p775_p1 = scmp.lt.u32.totalorder %s771_s9, %s1071_s1 }
   0x7   :  { %p777_p2 = pnand %p775_p1, %p772_p0 }
   0x9   :  { %780 = shalt.err (!%p777_p2)
}
   0xa   :  { %s781_s14 = scalar_lea.vmem %s33_s28, 1024  ;;  %p786_p4 = scmp.lt.s32.totalorder %s33_s28, %s33_s28 }
   0xb   :  { %p782_p3 = scmp.ne.s32.totalorder %s33_s28, %s781_s14  ;;  %p787_p5 = scmp.lt.s32.totalorder %s781_s14, %s781_s14 }
   0xd   :  { %p788_p6 = por %p787_p5, %p786_p4 }
   0xf   :  { %p789_p7 = pnand %p788_p6, %p782_p3 }
  0x11   :  { %792 = shalt.err (!%p789_p7)
}
  0x12   :  { %s890_s15 = smov 64   ;;  %s891_s16 = smov 4  }
  0x13   :  { %38 = dma.hbm_to_vmem [thread:$0]  %s1071_s1, 1024, %s33_s28, [#allocation6], %s890_s15, %s890_s15, %s891_s16  }
  0x14   :  { %s892_s19 = smov [#allocation2]   ;;  %s893_s21 = smov [#allocation7]  }
  0x15   :  { %s23_s20 = sshll.u32 %s892_s19, 4  ;;  %s46_s22 = sshll.u32 %s893_s21, 4  ;;  %s24_s20 = int_to_ptr.vmem [resolvable:$true] %s23_s20  ;;  %s47_s22 = int_to_ptr.vmem [resolvable:$true] %s46_s22 }
  0x16   :  { %s793_s25 = scalar_lea.hbm %s1070_s0, 64 }
  0x17   :  { %p794_p8 = scmp.ne.s32.totalorder %s1070_s0, %s793_s25  ;;  %p797_p9 = scmp.lt.u32.totalorder %s793_s25, %s1070_s0 }
  0x19   :  { %p799_p10 = pnand %p797_p9, %p794_p8 }
  0x1b   :  { %802 = shalt.err (!%p799_p10)
}
  0x1c   :  { %s803_s1 = scalar_lea.vmem %s24_s20, 64  ;;  %p808_p12 = scmp.lt.s32.totalorder %s24_s20, %s24_s20 }
  0x1d   :  { %p804_p11 = scmp.ne.s32.totalorder %s24_s20, %s803_s1  ;;  %p809_p13 = scmp.lt.s32.totalorder %s803_s1, %s803_s1 }
  0x1f   :  { %p810_p0 = por %p809_p13, %p808_p12 }
  0x21   :  { %p811_p1 = pnand %p810_p0, %p804_p11 }
  0x23   :  { %814 = shalt.err (!%p811_p1)
}
  0x24   :  { %26 = dma.hbm_to_vmem [thread:$0]  %s1070_s0, 64, %s24_s20, [#allocation3]  }
  0x25   :  { %s815_s12 = scalar_lea.hbm %s1073_s3, 2048 }
  0x26   :  { %p816_p2 = scmp.ne.s32.totalorder %s1073_s3, %s815_s12  ;;  %p819_p3 = scmp.lt.u32.totalorder %s815_s12, %s1073_s3 }
  0x28   :  { %p821_p4 = pnand %p819_p3, %p816_p2 }
  0x2a   :  { %824 = shalt.err (!%p821_p4)
}
  0x2b   :  { %s825_s19 = scalar_lea.vmem %s47_s22, 2048  ;;  %p830_p6 = scmp.lt.s32.totalorder %s47_s22, %s47_s22 }
  0x2c   :  { %p826_p5 = scmp.ne.s32.totalorder %s47_s22, %s825_s19  ;;  %p831_p7 = scmp.lt.s32.totalorder %s825_s19, %s825_s19 }
  0x2e   :  { %p832_p8 = por %p831_p7, %p830_p6 }
  0x30   :  { %p833_p9 = pnand %p832_p8, %p826_p5 }
  0x32   :  { %836 = shalt.err (!%p833_p9)
}
  0x33   :  { %52 = dma.hbm_to_vmem [thread:$0]  %s1073_s3, 2048, %s47_s22, [#allocation6], %s890_s15, %s890_s15, %s891_s16  }
  0x34   :  { %s894_s21 = smov [#allocation8]   ;;  %s837_s26 = scalar_lea.hbm %s1076_s6, 1024 }
  0x35   :  { %s62_s23 = sshll.u32 %s894_s21, 4  ;;  %p838_p10 = scmp.ne.s32.totalorder %s1076_s6, %s837_s26  ;;  %s63_s23 = int_to_ptr.vmem [resolvable:$true] %s62_s23 }
  0x36   :  { %p841_p11 = scmp.lt.u32.totalorder %s837_s26, %s1076_s6 }
  0x38   :  { %p843_p12 = pnand %p841_p11, %p838_p10 }
  0x3a   :  { %846 = shalt.err (!%p843_p12)
}
  0x3b   :  { %s847_s28 = scalar_lea.vmem %s63_s23, 1024  ;;  %p852_p0 = scmp.lt.s32.totalorder %s63_s23, %s63_s23 }
  0x3c   :  { %p848_p13 = scmp.ne.s32.totalorder %s63_s23, %s847_s28  ;;  %p853_p1 = scmp.lt.s32.totalorder %s847_s28, %s847_s28 }
  0x3e   :  { %p854_p2 = por %p853_p1, %p852_p0 }
  0x40   :  { %p855_p3 = pnand %p854_p2, %p848_p13 }
  0x42   :  { %858 = shalt.err (!%p855_p3)
}
  0x43   :  { %68 = dma.hbm_to_vmem [thread:$0]  %s1076_s6, 1024, %s63_s23, [#allocation9], %s890_s15, %s890_s15, %s891_s16  }
  0x44   :  { %881 = dma.done.wait [#allocation3], 64  }
  0x45   :  { %882 = vsyncadd [#allocation3], 4294967232 }
  0x46   :  { %883 = dma.done.wait [#allocation6], 3072  }
  0x47   :  { %884 = vsyncadd [#allocation6], 4294964224 }
  0x48   :  { %885 = dma.done.wait [#allocation9], 1024  }
  0x49   :  { %886 = vsyncadd [#allocation9], 4294966272  ;;  %v895_v0 = vmov 0.0   ;;  %vm896_vm0 = vmmov 0   ;;  %v739_v1 = vld [vmem:[#allocation5] sm:$0xff]   ;;  %v740_v2 = vld [vmem:[#allocation5 + $0x8] sm:$0xff]  }
  0x4a   :  { %650 = vmatprep.subr.bf16.mxu0 %v895_v0  ;;  %666 = vmatprep.mubr.msk.bf16.mxu0 %vm896_vm0, %v895_v0  ;;  %v741_v3 = vld [vmem:[#allocation5 + $0x10] sm:$0xff]   ;;  %v747_v4 = vld [vmem:[#allocation7] sm:$0xff]   ;;  %v742_v5 = vld [vmem:[#allocation5 + $0x18] sm:$0xff]   ;;  %s897_s19 = smov [#allocation10]  }
  0x4b   :  { %670 = vmatprep.subr.bf16.mxu1 %v895_v0  ;;  %686 = vmatprep.mubr.msk.bf16.mxu1 %vm896_vm0, %v895_v0  ;;  %v748_v6 = vld [vmem:[#allocation7 + $0x8] sm:$0xff]   ;;  %v743_v7 = vld [vmem:[#allocation5 + $0x20] sm:$0xff]   ;;  %v749_v8 = vld [vmem:[#allocation7 + $0x10] sm:$0xff]   ;;  %s563_s0 = sshll.u32 %s897_s19, 4  ;;  %s564_s0 = int_to_ptr.vmem [resolvable:$true] %s563_s0 }
  0x4c   :  { %651 = vmatpush3.bf16.msra.mxu0 %v739_v1  ;;  %671 = vmatpush3.bf16.msra.mxu1 %v747_v4  ;;  %v744_v9 = vld [vmem:[#allocation5 + $0x28] sm:$0xff]   ;;  %v750_v10 = vld [vmem:[#allocation7 + $0x18] sm:$0xff]   ;;  %v745_v11 = vld [vmem:[#allocation5 + $0x30] sm:$0xff]   ;;  %p864_p5 = scmp.lt.s32.totalorder %s564_s0, %s564_s0 }
  0x4d   :  { %652 = vmatprep.subr.bf16.mxu0 %v895_v0  ;;  %672 = vmatprep.subr.bf16.mxu1 %v895_v0  ;;  %v751_v12 = vld [vmem:[#allocation7 + $0x20] sm:$0xff]   ;;  %v746_v13 = vld [vmem:[#allocation5 + $0x38] sm:$0xff]   ;;  %v752_v14 = vld [vmem:[#allocation7 + $0x28] sm:$0xff]  }
  0x4e   :  { %v84_v15 = vld [vmem:[#allocation2] sm:$0xf]  ;;  %v753_v16 = vld [vmem:[#allocation7 + $0x30] sm:$0xff]   ;;  %v755_v18 = vld [vmem:[#allocation7 + $0x40] sm:$0xff]  }
  0x4f   :  { %v754_v17 = vld [vmem:[#allocation7 + $0x38] sm:$0xff]   ;;  %v756_v19 = vld [vmem:[#allocation7 + $0x48] sm:$0xff]   ;;  %v757_v20 = vld [vmem:[#allocation7 + $0x50] sm:$0xff]  }
  0x50   :  { %653 = vmatpush3.bf16.msra.mxu0 %v740_v2  ;;  %673 = vmatpush3.bf16.msra.mxu1 %v748_v6  ;;  %v758_v21 = vld [vmem:[#allocation7 + $0x58] sm:$0xff]   ;;  %v759_v22 = vld [vmem:[#allocation7 + $0x60] sm:$0xff]   ;;  %v760_v23 = vld [vmem:[#allocation7 + $0x68] sm:$0xff]  }
  0x51   :  { %654 = vmatprep.subr.bf16.mxu0 %v895_v0  ;;  %674 = vmatprep.subr.bf16.mxu1 %v895_v0  ;;  %v574_v24 = vld [vmem:[%s1072_s2] ss:$0 sm:$0xff]  ;;  %v761_v32 = vld [vmem:[#allocation7 + $0x70] sm:$0xff]   ;;  %v763_v34 = vld [vmem:[#allocation8] sm:$0xff]  }
  0x52   :  { %v762_v33 = vld [vmem:[#allocation7 + $0x78] sm:$0xff]   ;;  %v764_v35 = vld [vmem:[#allocation8 + $0x8] sm:$0xff]   ;;  %v765_v36 = vld [vmem:[#allocation8 + $0x10] sm:$0xff]  }
  0x53   :  { %v766_v37 = vld [vmem:[#allocation8 + $0x18] sm:$0xff]   ;;  %v767_v38 = vld [vmem:[#allocation8 + $0x20] sm:$0xff]   ;;  %v768_v39 = vld [vmem:[#allocation8 + $0x28] sm:$0xff]  }
  0x54   :  { %655 = vmatpush3.bf16.msra.mxu0 %v741_v3  ;;  %675 = vmatpush3.bf16.msra.mxu1 %v749_v8  ;;  %v591_v40 = vld [vmem:[%s1074_s4] ss:$0 sm:$0xff]  ;;  %v769_v50 = vld [vmem:[#allocation8 + $0x30] sm:$0xff]   ;;  %v602_v52 = vld [vmem:[%s1074_s4 + $0x1] ss:$0 sm:$0xff]  ;;  %s859_s4 = scalar_lea.vmem %s564_s0, 128 }
  0x55   :  { %656 = vmatprep.subr.bf16.mxu0 %v895_v0  ;;  %676 = vmatprep.subr.bf16.mxu1 %v895_v0  ;;  %v592_v42 = vld [vmem:[%s1075_s5] ss:$0 sm:$0xff]  ;;  %v604_v54 = vld [vmem:[%s1075_s5 + $0x1] ss:$0 sm:$0xff]  ;;  %p860_p4 = scmp.ne.s32.totalorder %s564_s0, %s859_s4  ;;  %p865_p6 = scmp.lt.s32.totalorder %s859_s4, %s859_s4 }
  0x56   :  { %v770_v51 = vld [vmem:[#allocation8 + $0x38] sm:$0xff]  }
  0x57   :  { %v605_v62 = vld [vmem:[%s1077_s7] ss:$0 sm:$0xff]  ;;  %p866_p7 = por %p865_p6, %p864_p5 }
  0x58   :  { %657 = vmatpush3.bf16.msra.mxu0 %v742_v5  ;;  %677 = vmatpush3.bf16.msra.mxu1 %v750_v10 }
  0x59   :  { %658 = vmatprep.subr.bf16.mxu0 %v895_v0  ;;  %678 = vmatprep.subr.bf16.mxu1 %v895_v0  ;;  %p867_p8 = pnand %p866_p7, %p860_p4 }
  0x5c   :  { %659 = vmatpush3.bf16.msra.mxu0 %v743_v7  ;;  %679 = vmatpush3.bf16.msra.mxu1 %v751_v12 }
  0x5d   :  { %660 = vmatprep.subr.bf16.mxu0 %v895_v0  ;;  %680 = vmatprep.subr.bf16.mxu1 %v895_v0 }
  0x60   :  { %661 = vmatpush3.bf16.msra.mxu0 %v744_v9  ;;  %681 = vmatpush3.bf16.msra.mxu1 %v752_v14 }
  0x61   :  { %662 = vmatprep.subr.bf16.mxu0 %v895_v0  ;;  %682 = vmatprep.subr.bf16.mxu1 %v895_v0 }
  0x64   :  { %663 = vmatpush3.bf16.msra.mxu0 %v745_v11  ;;  %683 = vmatpush3.bf16.msra.mxu1 %v753_v16 }
  0x65   :  { %664 = vmatprep.subr.bf16.mxu0 %v895_v0  ;;  %684 = vmatprep.subr.bf16.mxu1 %v895_v0 }
  0x68   :  { %665 = vmatpush3.bf16.msra.mxu0 %v746_v13  ;;  %685 = vmatpush3.bf16.msra.mxu1 %v754_v17 }
  0x69   :  { %690 = vmatprep.subr.bf16.mxu0 %v895_v0  ;;  %710 = vmatprep.subr.bf16.mxu1 %v895_v0 }
  0x6b   :  { %667 = vmatmul.mubr.bf16.vlgmr.msra.gmra.mrb[0].mxu0 %v84_v15 }
  0x6c   :  { %706 = vmatprep.mubr.msk.bf16.mxu0 %vm896_vm0, %v895_v0  ;;  %691 = vmatpush3.bf16.msra.mxu0 %v755_v18 }
  0x6d   :  { %692 = vmatprep.subr.bf16.mxu0 %v895_v0 }
  0x70   :  { %693 = vmatpush3.bf16.msra.mxu0 %v756_v19 }
  0x71   :  { %694 = vmatprep.subr.bf16.mxu0 %v895_v0 }
  0x74   :  { %695 = vmatpush3.bf16.msra.mxu0 %v757_v20 }
  0x75   :  { %696 = vmatprep.subr.bf16.mxu0 %v895_v0 }
  0x78   :  { %697 = vmatpush3.bf16.msra.mxu0 %v758_v21 }
  0x79   :  { %698 = vmatprep.subr.bf16.mxu0 %v895_v0 }
  0x7c   :  { %699 = vmatpush3.bf16.msra.mxu0 %v759_v22 }
  0x7d   :  { %700 = vmatprep.subr.bf16.mxu0 %v895_v0 }
  0x80   :  { %701 = vmatpush3.bf16.msra.mxu0 %v760_v23 }
  0x81   :  { %702 = vmatprep.subr.bf16.mxu0 %v895_v0 }
  0x84   :  { %703 = vmatpush3.bf16.msra.mxu0 %v761_v32 }
  0x85   :  { %704 = vmatprep.subr.bf16.mxu0 %v895_v0 }
  0x88   :  { %705 = vmatpush3.bf16.msra.mxu0 %v762_v33 }
 0x13e   :  { %v190_v25 = vpop.f32.mrb[0].mxu0 }
 0x13f   :  { %v191_v26 = vadd.f32 %v574_v24, %v190_v25  ;;  %v668_v27 = vpop.f32.mrb[1].mxu0 }
 0x140   :  { %v193_v28 = vpop.f32.mrb[2].mxu0 }
 0x141   :  { %v196_v29 = vmax.f32 %v191_v26, 0.0  ;;  %v669_v30 = vpop.f32.mrb[3].mxu0 }
 0x143   :  { %v197_v31 = vpack.c.bf16 %v196_v29, %v196_v29 }
 0x145   :  { %687 = vmatmul.mubr.bf16.vlgmr.msra.gmra.mrb[0].mxu1 %v197_v31 }
 0x146   :  { %726 = vmatprep.mubr.msk.bf16.mxu1 %vm896_vm0, %v895_v0  ;;  %711 = vmatpush3.bf16.msra.mxu1 %v763_v34 }
 0x147   :  { %712 = vmatprep.subr.bf16.mxu1 %v895_v0 }
 0x14a   :  { %713 = vmatpush3.bf16.msra.mxu1 %v764_v35 }
 0x14b   :  { %714 = vmatprep.subr.bf16.mxu1 %v895_v0 }
 0x14e   :  { %715 = vmatpush3.bf16.msra.mxu1 %v765_v36 }
 0x14f   :  { %716 = vmatprep.subr.bf16.mxu1 %v895_v0 }
 0x152   :  { %717 = vmatpush3.bf16.msra.mxu1 %v766_v37 }
 0x153   :  { %718 = vmatprep.subr.bf16.mxu1 %v895_v0 }
 0x156   :  { %719 = vmatpush3.bf16.msra.mxu1 %v767_v38 }
 0x157   :  { %720 = vmatprep.subr.bf16.mxu1 %v895_v0 }
 0x15a   :  { %721 = vmatpush3.bf16.msra.mxu1 %v768_v39 }
 0x15b   :  { %722 = vmatprep.subr.bf16.mxu1 %v895_v0 }
 0x15e   :  { %723 = vmatpush3.bf16.msra.mxu1 %v769_v50 }
 0x15f   :  { %724 = vmatprep.subr.bf16.mxu1 %v895_v0 }
 0x162   :  { %725 = vmatpush3.bf16.msra.mxu1 %v770_v51 }
 0x218   :  { %v296_v41 = vpop.f32.mrb[0].mxu1 }
 0x219   :  { %v309_v43 = vmul.f32 %v591_v40, %v296_v41  ;;  %v688_v44 = vpop.f32.mrb[1].mxu1 }
 0x21a   :  { %v299_v45 = vpop.f32.mrb[2].mxu1 }
 0x21b   :  { %v317_v46 = vadd.f32 %v592_v42, %v309_v43  ;;  %v689_v47 = vpop.f32.mrb[3].mxu1 }
 0x21d   :  { %v318_v48 = vmax.f32 %v317_v46, 0.0 }
 0x21f   :  { %v319_v49 = vpack.c.bf16 %v318_v48, %v318_v48 }
 0x221   :  { %707 = vmatmul.mubr.bf16.vlgmr.msra.gmra.mrb[4].mxu0 %v319_v49 }
 0x2f4   :  { %v419_v53 = vpop.f32.mrb[4].mxu0 }
 0x2f5   :  { %v433_v55 = vmul.f32 %v602_v52, %v419_v53  ;;  %v708_v56 = vpop.f32.mrb[5].mxu0 }
 0x2f6   :  { %v422_v57 = vpop.f32.mrb[6].mxu0 }
 0x2f7   :  { %v442_v58 = vadd.f32 %v604_v54, %v433_v55  ;;  %v709_v59 = vpop.f32.mrb[7].mxu0 }
 0x2f9   :  { %v443_v60 = vmax.f32 %v442_v58, 0.0 }
 0x2fb   :  { %v444_v61 = vpack.c.bf16 %v443_v60, %v443_v60 }
 0x2fd   :  { %727 = vmatmul.mubr.bf16.vlgmr.msra.gmra.mrb[4].mxu1 %v444_v61 }
 0x3d0   :  { %v550_v63 = vpop.f32.mrb[4].mxu1 }
 0x3d1   :  { %v551_v0 = vadd.f32 %v605_v62, %v550_v63  ;;  %v728_v1 = vpop.f32.mrb[5].mxu1 }
 0x3d2   :  { %v553_v2 = vpop.f32.mrb[6].mxu1 }
 0x3d3   :  { %556 = vst [vmem:[#allocation10] sm:$0xff] %v551_v0  ;;  %v729_v3 = vpop.f32.mrb[7].mxu1 }
 0x3d4   :  { %870 = shalt.err (!%p867_p8)
}
 0x3d5   :  { %s871_s7 = scalar_lea.hbm %s1078_s8, 128 }
 0x3d6   :  { %p872_p9 = scmp.ne.s32.totalorder %s1078_s8, %s871_s7  ;;  %p875_p10 = scmp.lt.u32.totalorder %s871_s7, %s1078_s8 }
 0x3d8   :  { %p877_p11 = pnand %p875_p10, %p872_p9 }
 0x3da   :  { %880 = shalt.err (!%p877_p11)
}
 0x3db   :  { %566 = dma.vmem_to_hbm [thread:$0]  %s564_s0, 128, %s1078_s8, [#allocation4]  }
 0x3dc   :  { %887 = dma.done.wait [#allocation4], 128  }
 0x3dd   :  { %888 = vsyncadd [#allocation4], 4294967168 }
 0x3de   :  { %570 = vsyncpa [#allocation3], 1 }
 0x3df   :  { %571 = vsyncpa [#allocation6], 1 }
 0x3e0   :  { %572 = vsyncpa [#allocation9], 1 }
 0x3e1   :  { %573 = vsyncpa [#allocation4], 1 }

</bundles_post_ra>
